<compile_context>
chip_gen: v6e
topology: v6e:2x2x1
jax: 0.10.0
libtpu: 0.0.40
codegen_flags: <defaults>
</compile_context>

<pallas_src>
import jax
import jax.numpy as jnp
from jax.experimental import pallas as pl
from jax.experimental.pallas import tpu as pltpu


# ---------------------------------------------------------------------------
# Kernels
# ---------------------------------------------------------------------------

def mlp_kernel_resident(x_ref, w1_ref, w2_ref, o_ref):
    # x_ref:  (tm, Dp)  activation row tile
    # w1_ref: (Dp, Hp)  c_fc^T, fully VMEM-resident (constant index map)
    # w2_ref: (Hp, Dp)  c_proj^T, fully VMEM-resident
    # o_ref:  (tm, Dp)  output row tile
    h = jnp.dot(x_ref[...], w1_ref[...], preferred_element_type=jnp.float32)
    h = jnp.maximum(h, 0.0)
    h = h * h
    o_ref[...] = jnp.dot(h.astype(w2_ref.dtype), w2_ref[...],
                         preferred_element_type=jnp.float32).astype(o_ref.dtype)


def mlp_kernel_streamed(x_ref, w1_ref, w2_ref, o_ref, acc_ref):
    # Hidden-tiled fallback: grid=(rows, hidden tiles); accumulate y over the
    # hidden (reduction) axis in an f32 VMEM scratch.
    @pl.when(pl.program_id(1) == 0)
    def _():
        acc_ref[...] = jnp.zeros_like(acc_ref)

    h = jnp.dot(x_ref[...], w1_ref[...], preferred_element_type=jnp.float32)
    h = jnp.maximum(h, 0.0)
    h = h * h
    acc_ref[...] += jnp.dot(h.astype(w2_ref.dtype), w2_ref[...],
                            preferred_element_type=jnp.float32)

    @pl.when(pl.program_id(1) == pl.num_programs(1) - 1)
    def _():
        o_ref[...] = acc_ref[...].astype(o_ref.dtype)


# ---------------------------------------------------------------------------
# Sizing helpers
# ---------------------------------------------------------------------------

def _round_up(a, b):
    return ((a + b - 1) // b) * b


def _cdiv(a, b):
    return (a + b - 1) // b


def _vmem_capacity_bytes():
    try:
        return int(pltpu.get_tpu_info().vmem_capacity_bytes)
    except Exception:
        return 64 << 20  # conservative: v7x has 64 MiB per TensorCore


def _resident_bytes(tm, dp, hp, in_isz, out_isz):
    # double-buffered x/out tiles + (double-buffered but fetched-once) weights
    # + f32 hidden intermediate and its low-precision copy for the 2nd matmul.
    return (2 * tm * dp * in_isz + 2 * tm * dp * out_isz
            + 2 * 2 * dp * hp * in_isz
            + tm * hp * 4 + tm * hp * in_isz)


def _streamed_bytes(tm, th, dp, in_isz, out_isz, wbuf):
    return (2 * tm * dp * in_isz + 2 * tm * dp * out_isz
            + 2 * wbuf * dp * th * in_isz
            + tm * dp * 4                        # f32 accumulator scratch
            + tm * th * 4 + tm * th * in_isz)    # hidden intermediate


# ---------------------------------------------------------------------------
# Wrapper
# ---------------------------------------------------------------------------

def mlp_forward(x, w_fc, w_proj, *, tm=1024, compute_dtype=jnp.bfloat16,
                weights_resident=None, weight_buffers=3):
    """y = relu(x @ w_fc.T)^2 @ w_proj.T.

    x: [B, T, D]; w_fc: [4D, D]; w_proj: [D, 4D]. Returns [B, T, D] in x.dtype.

    compute_dtype: MXU input dtype (default bf16 with f32 accumulation; pass
      jnp.float32 / None for exact f32 module semantics).
    weights_resident: None = auto (VMEM-budget fit test); True/False forces the
      fully-resident / hidden-streamed variant.
    weight_buffers: weight pipeline depth for the streamed variant.
    """
    B, T, D = x.shape
    H = w_fc.shape[0]
    assert w_fc.shape == (H, D) and w_proj.shape == (D, H)

    out_dtype = x.dtype
    cdtype = jnp.dtype(compute_dtype) if compute_dtype is not None else jnp.dtype(x.dtype)
    in_isz = jnp.dtype(cdtype).itemsize
    out_isz = jnp.dtype(out_dtype).itemsize

    M = B * T
    Dp = _round_up(D, 128)   # lane-dense blocks -> unmasked vector stores
    Hp = _round_up(H, 128)

    vmem_cap = _vmem_capacity_bytes()
    budget = int(0.65 * vmem_cap)

    def shrink(t):
        return max(128, _round_up(t // 2, 128))

    # Row tile: 128-aligned, shrunk for small M.
    tm = max(128, min(_round_up(tm, 128), _round_up(M, 128)))
    # v7x megacore: give the parallel row axis >= 2 tiles when possible.
    while tm > 128 and _cdiv(M, tm) < 2:
        tm = shrink(tm)

    # Prefer fully VMEM-resident weights (weights cross HBM once per call).
    use_resident = weights_resident
    if use_resident is None or use_resident:
        t = tm
        while _resident_bytes(t, Dp, Hp, in_isz, out_isz) > budget and t > 128:
            t = shrink(t)
        fits = _resident_bytes(t, Dp, Hp, in_isz, out_isz) <= budget
        if use_resident is None:
            use_resident = fits
        if use_resident:
            tm = t

    th = None
    if not use_resident:
        # Largest 128-multiple divisor of Hp whose working set fits; shrink tm
        # if even th=128 does not fit.
        nh = Hp // 128
        t = tm
        while th is None:
            for d in range(nh, 0, -1):
                if nh % d == 0 and _streamed_bytes(
                        t, 128 * d, Dp, in_isz, out_isz, weight_buffers) <= budget:
                    th, tm = 128 * d, t
                    break
            if th is None:
                if t <= 128:
                    th, tm = 128, 128
                else:
                    t = shrink(t)

    M_pad = _round_up(M, tm)
    n_rows = M_pad // tm

    # Pad + cast (zero-padded rows/cols flow through the MLP as exact zeros).
    x2d = jnp.pad(x.reshape(M, D).astype(cdtype), ((0, M_pad - M), (0, Dp - D)))
    w1t = jnp.pad(w_fc.T.astype(cdtype), ((0, Dp - D), (0, Hp - H)))    # (Dp, Hp)
    w2t = jnp.pad(w_proj.T.astype(cdtype), ((0, Hp - H), (0, Dp - D)))  # (Hp, Dp)

    if use_resident:
        buf_bytes = _resident_bytes(tm, Dp, Hp, in_isz, out_isz)
        weight_hbm_bytes = 2 * Dp * Hp * in_isz
    else:
        buf_bytes = _streamed_bytes(tm, th, Dp, in_isz, out_isz, weight_buffers)
        weight_hbm_bytes = n_rows * 2 * Dp * Hp * in_isz

    # Actual buffer sum + headroom, never above 0.75x physical VMEM.
    vmem_limit = int(max(buf_bytes + (8 << 20), 32 << 20))
    vmem_limit = int(min(vmem_limit, int(0.75 * vmem_cap)))

    cost = pl.CostEstimate(
        flops=4 * M_pad * Dp * Hp,             # two matmuls, 2*M*D*H each
        transcendentals=0,
        bytes_accessed=int(M_pad * Dp * (in_isz + out_isz) + weight_hbm_bytes),
    )

    if use_resident:
        out2d = pl.pallas_call(
            mlp_kernel_resident,
            out_shape=jax.ShapeDtypeStruct((M_pad, Dp), out_dtype),
            grid_spec=pltpu.PrefetchScalarGridSpec(
                num_scalar_prefetch=0,
                grid=(n_rows,),
                in_specs=[
                    pl.BlockSpec((tm, Dp), lambda i: (i, 0)),   # activations
                    pl.BlockSpec((Dp, Hp), lambda i: (0, 0)),   # c_fc^T, resident
                    pl.BlockSpec((Hp, Dp), lambda i: (0, 0)),   # c_proj^T, resident
                ],
                out_specs=pl.BlockSpec((tm, Dp), lambda i: (i, 0)),
            ),
            compiler_params=pltpu.CompilerParams(
                dimension_semantics=("parallel",),
                vmem_limit_bytes=vmem_limit,
            ),
            cost_estimate=cost,
        )(x2d, w1t, w2t)
    else:
        nj = Hp // th
        w1_spec = pl.BlockSpec((Dp, th), lambda i, j: (0, j))
        w2_spec = pl.BlockSpec((th, Dp), lambda i, j: (j, 0))
        if weight_buffers and weight_buffers > 2 and nj >= weight_buffers:
            try:  # deeper weight pipelining hides the per-step weight DMA
                w1_spec = pl.BlockSpec((Dp, th), lambda i, j: (0, j),
                                       pipeline_mode=pl.Buffered(weight_buffers))
                w2_spec = pl.BlockSpec((th, Dp), lambda i, j: (j, 0),
                                       pipeline_mode=pl.Buffered(weight_buffers))
            except TypeError:
                pass
        out2d = pl.pallas_call(
            mlp_kernel_streamed,
            out_shape=jax.ShapeDtypeStruct((M_pad, Dp), out_dtype),
            grid_spec=pltpu.PrefetchScalarGridSpec(
                num_scalar_prefetch=0,
                grid=(n_rows, nj),
                in_specs=[
                    pl.BlockSpec((tm, Dp), lambda i, j: (i, 0)),
                    w1_spec,
                    w2_spec,
                ],
                out_specs=pl.BlockSpec((tm, Dp), lambda i, j: (i, 0)),
                scratch_shapes=[pltpu.VMEM((tm, Dp), jnp.float32)],
            ),
            compiler_params=pltpu.CompilerParams(
                dimension_semantics=("parallel", "arbitrary"),
                vmem_limit_bytes=vmem_limit,
            ),
            cost_estimate=cost,
        )(x2d, w1t, w2t)

    return out2d[:M, :D].reshape(B, T, D)


def mlp_reference(x, w_fc, w_proj):
    h = jnp.einsum("btd,hd->bth", x, w_fc)
    h = jnp.maximum(h, 0.0)
    h = h * h
    return jnp.einsum("bth,dh->btd", h, w_proj)


if __name__ == "__main__":
    B, T, dim = 2, 8, 32
    hdim = 4 * dim

    key = jax.random.PRNGKey(0)
    kx, kw1, kw2, kx2 = jax.random.split(key, 4)

    x = jax.random.normal(kx, (B, T, dim), dtype=jnp.float32)

    # CastedLinear.reset_parameters: uniform(-bound, bound), bound = sqrt(3)*0.5/sqrt(in)
    bound_fc = (3.0 ** 0.5) * 0.5 * dim ** (-0.5)
    w_fc = jax.random.uniform(kw1, (hdim, dim), dtype=jnp.float32,
                              minval=-bound_fc, maxval=bound_fc)
    # NOTE: the original module zero-inits c_proj.weight; use a nonzero init so
    # the numerical check is meaningful (forward semantics identical either way).
    bound_pr = (3.0 ** 0.5) * 0.5 * hdim ** (-0.5)
    w_proj = jax.random.uniform(kw2, (dim, hdim), dtype=jnp.float32,
                                minval=-bound_pr, maxval=bound_pr)

    y_ref = mlp_reference(x, w_fc, w_proj)

    # 1) exact f32 path (matches the module's non-fp8 semantics).
    y_f32 = mlp_forward(x, w_fc, w_proj, compute_dtype=jnp.float32)
    jax.block_until_ready(y_f32)
    assert y_f32.shape == (B, T, dim)
    assert jnp.allclose(y_f32, y_ref, atol=1e-5, rtol=1e-5), "f32 mismatch vs reference"

    # 2) default perf path: bf16 MXU inputs, f32 accumulation (loose check).
    y_bf16 = mlp_forward(x, w_fc, w_proj)
    jax.block_until_ready(y_bf16)
    assert jnp.allclose(y_bf16, y_ref, atol=3e-2, rtol=3e-2), "bf16 mismatch vs reference"

    # 3) ragged row count (exercises row + lane zero-padding), f32.
    x_ragged = jax.random.normal(kx2, (1, 5, dim), dtype=jnp.float32)
    y_ragged = mlp_forward(x_ragged, w_fc, w_proj, compute_dtype=jnp.float32)
    jax.block_until_ready(y_ragged)
    assert jnp.allclose(y_ragged, mlp_reference(x_ragged, w_fc, w_proj),
                        atol=1e-5, rtol=1e-5), "ragged mismatch vs reference"

    # 4) hidden-streamed fallback (forced), f32 — exercises the accumulator path.
    y_str = mlp_forward(x, w_fc, w_proj, compute_dtype=jnp.float32,
                        weights_resident=False)
    jax.block_until_ready(y_str)
    assert jnp.allclose(y_str, y_ref, atol=1e-5, rtol=1e-5), "streamed mismatch vs reference"

    print("KERNEL_OK")
</pallas_src>

<mosaic_0001>
module attributes {stable_mosaic.version = 11 : i64} {
  func.func @mlp_kernel_resident(%arg0: i32, %arg1: memref<128x128xf32, #tpu.memory_space<vmem>>, %arg2: memref<128x128xf32, #tpu.memory_space<vmem>>, %arg3: memref<128x128xf32, #tpu.memory_space<vmem>>, %arg4: memref<128x128xf32, #tpu.memory_space<vmem>>) attributes {dimension_semantics = [#tpu.dimension_semantics<parallel>], iteration_bounds = array<i64: 1>, scalar_prefetch = 0 : i64, scratch_operands = 0 : i64, tpu.core_type = #tpu.core_type<tc>, window_params = [{transform_indices = @transform_0, window_bounds = array<i64: 128, 128>}, {pipeline_mode = #tpu.pipeline_mode<synchronous>, transform_indices = @transform_1, window_bounds = array<i64: 128, 128>}, {pipeline_mode = #tpu.pipeline_mode<synchronous>, transform_indices = @transform_2, window_bounds = array<i64: 128, 128>}, {transform_indices = @transform_3, window_bounds = array<i64: 128, 128>}]} {
    %c0 = arith.constant 0 : index
    %c0_0 = arith.constant 0 : index
    %0 = vector.load %arg1[%c0, %c0_0] : memref<128x128xf32, #tpu.memory_space<vmem>>, vector<128x128xf32>
    %c0_1 = arith.constant 0 : index
    %c0_2 = arith.constant 0 : index
    %1 = vector.load %arg2[%c0_1, %c0_2] : memref<128x128xf32, #tpu.memory_space<vmem>>, vector<128x128xf32>
    %cst = arith.constant dense<0.000000e+00> : vector<128x128xf32>
    %2 = tpu.matmul %0, %1, %cst {dimension_numbers = #tpu.dot_dimension_numbers<[1], [0], [0], [1], [0, 0, 1, 1], [], []>} : vector<128x128xf32>, vector<128x128xf32>, vector<128x128xf32> -> vector<128x128xf32>
    %cst_3 = arith.constant 0.000000e+00 : f32
    %3 = vector.broadcast %cst_3 : f32 to vector<128x128xf32>
    %4 = arith.maximumf %2, %3 : vector<128x128xf32>
    %5 = arith.mulf %4, %4 : vector<128x128xf32>
    %c0_4 = arith.constant 0 : index
    %c0_5 = arith.constant 0 : index
    %6 = vector.load %arg3[%c0_4, %c0_5] : memref<128x128xf32, #tpu.memory_space<vmem>>, vector<128x128xf32>
    %cst_6 = arith.constant dense<0.000000e+00> : vector<128x128xf32>
    %7 = tpu.matmul %5, %6, %cst_6 {dimension_numbers = #tpu.dot_dimension_numbers<[1], [0], [0], [1], [0, 0, 1, 1], [], []>} : vector<128x128xf32>, vector<128x128xf32>, vector<128x128xf32> -> vector<128x128xf32>
    %c0_7 = arith.constant 0 : index
    %c0_8 = arith.constant 0 : index
    %8 = vector.load %arg4[%c0_7, %c0_8] : memref<128x128xf32, #tpu.memory_space<vmem>>, vector<128x128xf32>
    tpu.vector_store %arg4[%c0_7, %c0_8], %7 {strides = array<i32>} : memref<128x128xf32, #tpu.memory_space<vmem>>, vector<128x128xf32>,
    return
  }
  func.func @transform_0(%arg0: i32) -> (i32, i32) {
    %c0_i32 = arith.constant 0 : i32
    %c0_i32_0 = arith.constant 0 : i32
    return %arg0, %c0_i32 : i32, i32
  }
  func.func @transform_1(%arg0: i32) -> (i32, i32) {
    %c0_i32 = arith.constant 0 : i32
    %c0_i32_0 = arith.constant 0 : i32
    %c0_i32_1 = arith.constant 0 : i32
    return %c0_i32, %c0_i32_0 : i32, i32
  }
  func.func @transform_2(%arg0: i32) -> (i32, i32) {
    %c0_i32 = arith.constant 0 : i32
    %c0_i32_0 = arith.constant 0 : i32
    %c0_i32_1 = arith.constant 0 : i32
    return %c0_i32, %c0_i32_0 : i32, i32
  }
  func.func @transform_3(%arg0: i32) -> (i32, i32) {
    %c0_i32 = arith.constant 0 : i32
    %c0_i32_0 = arith.constant 0 : i32
    return %arg0, %c0_i32 : i32, i32
  }
}

</mosaic_0001>

<bundles_post_ra>
// kernel: tpu_custom_call.1
= control target key start
LH: loop header
LB: loop body
LE: loop exit
PB: predicated region body
PF: predicated region fallthrough
CT: control target
= control target key end

     0   :  { %8 = vsyncpa [#allocation3], 0  ;;  %s778_s0 = inlined_call_operand.hbm [shape: f32[128,128], index: 0, kind: input, shape index: {}]   ;;  %s779_s1 = inlined_call_operand.hbm [shape: f32[128,128], index: 1, kind: input, shape index: {}]   ;;  %s780_s2 = inlined_call_operand.hbm [shape: f32[128,128], index: 2, kind: input, shape index: {}]   ;;  %s781_s3 = inlined_call_operand.hbm [shape: f32[128,128], index: 3, kind: output, shape index: {}]  }
   0x1   :  { %9 = vsyncpa [#allocation6], 0 }
   0x2   :  { %10 = vsyncpa [#allocation4], 0  ;;  %s728_s12 = smov [#allocation5]   ;;  %s729_s14 = smov [#allocation2]  }
   0x3   :  { %s28_s13 = sshll.u32 %s728_s12, 4  ;;  %s16_s15 = sshll.u32 %s729_s14, 4  ;;  %s29_s13 = int_to_ptr.vmem [resolvable:$true] %s28_s13  ;;  %s17_s15 = int_to_ptr.vmem [resolvable:$true] %s16_s15 }
   0x4   :  { %s650_s16 = scalar_lea.vmem %s29_s13, 2048  ;;  %p655_p1 = scmp.lt.s32.totalorder %s29_s13, %s29_s13 }
   0x5   :  { %p651_p0 = scmp.ne.s32.totalorder %s29_s13, %s650_s16  ;;  %p656_p2 = scmp.lt.s32.totalorder %s650_s16, %s650_s16 }
   0x7   :  { %p657_p3 = por %p656_p2, %p655_p1 }
   0x9   :  { %p658_p4 = pnand %p657_p3, %p651_p0 }
   0xb   :  { %661 = shalt.err (!%p658_p4)
}
   0xc   :  { %s730_s17 = smov 128   ;;  %s731_s18 = smov 8  }
   0xd   :  { %34 = dma.hbm_to_vmem [thread:$0]  %s779_s1, 2048, %s29_s13, [#allocation6], %s730_s17, %s730_s17, %s731_s18  }
   0xe   :  { %s670_s21 = scalar_lea.vmem %s17_s15, 2048  ;;  %p675_p6 = scmp.lt.s32.totalorder %s17_s15, %s17_s15 }
   0xf   :  { %p671_p5 = scmp.ne.s32.totalorder %s17_s15, %s670_s21  ;;  %p676_p7 = scmp.lt.s32.totalorder %s670_s21, %s670_s21 }
  0x11   :  { %p677_p8 = por %p676_p7, %p675_p6 }
  0x13   :  { %p678_p9 = pnand %p677_p8, %p671_p5 }
  0x15   :  { %681 = shalt.err (!%p678_p9)
}
  0x16   :  { %22 = dma.hbm_to_vmem [thread:$0]  %s778_s0, 2048, %s17_s15, [#allocation3], %s730_s17, %s730_s17, %s731_s18  }
  0x17   :  { %s732_s24 = smov [#allocation7]  }
  0x18   :  { %s40_s25 = sshll.u32 %s732_s24, 4  ;;  %s41_s25 = int_to_ptr.vmem [resolvable:$true] %s40_s25 }
  0x19   :  { %s690_s26 = scalar_lea.vmem %s41_s25, 2048  ;;  %p695_p11 = scmp.lt.s32.totalorder %s41_s25, %s41_s25 }
  0x1a   :  { %p691_p10 = scmp.ne.s32.totalorder %s41_s25, %s690_s26  ;;  %p696_p12 = scmp.lt.s32.totalorder %s690_s26, %s690_s26 }
  0x1c   :  { %p697_p13 = por %p696_p12, %p695_p11 }
  0x1e   :  { %p698_p0 = pnand %p697_p13, %p691_p10 }
  0x20   :  { %701 = shalt.err (!%p698_p0)
}
  0x21   :  { %46 = dma.hbm_to_vmem [thread:$0]  %s780_s2, 2048, %s41_s25, [#allocation6], %s730_s17, %s730_s17, %s731_s18  }
  0x22   :  { %722 = dma.done.wait [#allocation3], 2048  }
  0x23   :  { %723 = vsyncadd [#allocation3], 4294965248 }
  0x24   :  { %724 = dma.done.wait [#allocation6], 4096  }
  0x25   :  { %725 = vsyncadd [#allocation6], 4294963200  ;;  %v87_v0 = vld [vmem:[#allocation5 + $0x78] sm:$0xff]  ;;  %v86_v1 = vld [vmem:[#allocation5 + $0x70] sm:$0xff]  ;;  %s733_s0 = smov [#allocation8]  }
  0x26   :  { %524 = vmatprep.subr.mxu0 %v87_v0  ;;  %v85_v2 = vld [vmem:[#allocation5 + $0x68] sm:$0xff]  ;;  %v84_v3 = vld [vmem:[#allocation5 + $0x60] sm:$0xff]  ;;  %v83_v5 = vld [vmem:[#allocation5 + $0x58] sm:$0xff]  ;;  %s447_s2 = sshll.u32 %s733_s0, 4  ;;  %s448_s2 = int_to_ptr.vmem [resolvable:$true] %s447_s2 }
  0x27   :  { %525 = vmatpush3.msra.mxu0 %v87_v0  ;;  %v56_v4 = vld [vmem:[#allocation2] sm:$0xff]  ;;  %v82_v6 = vld [vmem:[#allocation5 + $0x50] sm:$0xff]  ;;  %v81_v7 = vld [vmem:[#allocation5 + $0x48] sm:$0xff]  ;;  %s702_s28 = scalar_lea.vmem %s448_s2, 2048  ;;  %p707_p2 = scmp.lt.s32.totalorder %s448_s2, %s448_s2 }
  0x28   :  { %526 = vmatprep.subr.mxu0 %v86_v1  ;;  %556 = vmatprep.mubr.f32.mxu0 %v56_v4  ;;  %v280_v8 = vld [vmem:[#allocation7 + $0x78] sm:$0xff]  ;;  %v279_v9 = vld [vmem:[#allocation7 + $0x70] sm:$0xff]  ;;  %v80_v10 = vld [vmem:[#allocation5 + $0x40] sm:$0xff]  ;;  %p703_p1 = scmp.ne.s32.totalorder %s448_s2, %s702_s28  ;;  %p708_p3 = scmp.lt.s32.totalorder %s702_s28, %s702_s28 }
  0x29   :  { %527 = vmatpush3.msra.mxu0 %v86_v1  ;;  %580 = vmatprep.subr.mxu1 %v280_v8  ;;  %v278_v11 = vld [vmem:[#allocation7 + $0x68] sm:$0xff]  ;;  %v79_v12 = vld [vmem:[#allocation5 + $0x38] sm:$0xff]  ;;  %v277_v13 = vld [vmem:[#allocation7 + $0x60] sm:$0xff] }
  0x2a   :  { %528 = vmatprep.subr.mxu0 %v85_v2  ;;  %581 = vmatpush3.msra.mxu1 %v280_v8  ;;  %v78_v14 = vld [vmem:[#allocation5 + $0x30] sm:$0xff]  ;;  %v276_v15 = vld [vmem:[#allocation7 + $0x58] sm:$0xff]  ;;  %v77_v16 = vld [vmem:[#allocation5 + $0x28] sm:$0xff]  ;;  %p709_p4 = por %p708_p3, %p707_p2 }
  0x2b   :  { %529 = vmatpush3.msra.mxu0 %v85_v2  ;;  %582 = vmatprep.subr.mxu1 %v279_v9  ;;  %v275_v17 = vld [vmem:[#allocation7 + $0x50] sm:$0xff]  ;;  %v76_v18 = vld [vmem:[#allocation5 + $0x20] sm:$0xff]  ;;  %v274_v19 = vld [vmem:[#allocation7 + $0x48] sm:$0xff] }
  0x2c   :  { %530 = vmatprep.subr.mxu0 %v84_v3  ;;  %583 = vmatpush3.msra.mxu1 %v279_v9  ;;  %v75_v20 = vld [vmem:[#allocation5 + $0x18] sm:$0xff]  ;;  %v273_v21 = vld [vmem:[#allocation7 + $0x40] sm:$0xff]  ;;  %v74_v22 = vld [vmem:[#allocation5 + $0x10] sm:$0xff]  ;;  %p710_p5 = pnand %p709_p4, %p703_p1 }
  0x2d   :  { %531 = vmatpush3.msra.mxu0 %v84_v3  ;;  %584 = vmatprep.subr.mxu1 %v278_v11  ;;  %v272_v23 = vld [vmem:[#allocation7 + $0x38] sm:$0xff]  ;;  %v73_v24 = vld [vmem:[#allocation5 + $0x8] sm:$0xff]  ;;  %v271_v25 = vld [vmem:[#allocation7 + $0x30] sm:$0xff] }
  0x2e   :  { %532 = vmatprep.subr.mxu0 %v83_v5  ;;  %585 = vmatpush3.msra.mxu1 %v278_v11  ;;  %v72_v26 = vld [vmem:[#allocation5] sm:$0xff]  ;;  %v270_v27 = vld [vmem:[#allocation7 + $0x28] sm:$0xff]  ;;  %v58_v30 = vld [vmem:[#allocation2 + $0x10] sm:$0xff] }
  0x2f   :  { %533 = vmatpush3.msra.mxu0 %v83_v5  ;;  %586 = vmatprep.subr.mxu1 %v277_v13  ;;  %v57_v28 = vld [vmem:[#allocation2 + $0x8] sm:$0xff]  ;;  %v269_v29 = vld [vmem:[#allocation7 + $0x20] sm:$0xff]  ;;  %v59_v31 = vld [vmem:[#allocation2 + $0x18] sm:$0xff] }
  0x30   :  { %534 = vmatprep.subr.mxu0 %v82_v6  ;;  %587 = vmatpush3.msra.mxu1 %v277_v13  ;;  %v60_v32 = vld [vmem:[#allocation2 + $0x20] sm:$0xff]  ;;  %v61_v33 = vld [vmem:[#allocation2 + $0x28] sm:$0xff]  ;;  %v62_v34 = vld [vmem:[#allocation2 + $0x30] sm:$0xff] }
  0x31   :  { %535 = vmatpush3.msra.mxu0 %v82_v6  ;;  %588 = vmatprep.subr.mxu1 %v276_v15  ;;  %v63_v35 = vld [vmem:[#allocation2 + $0x38] sm:$0xff]  ;;  %v64_v36 = vld [vmem:[#allocation2 + $0x40] sm:$0xff]  ;;  %v65_v37 = vld [vmem:[#allocation2 + $0x48] sm:$0xff] }
  0x32   :  { %536 = vmatprep.subr.mxu0 %v81_v7  ;;  %589 = vmatpush3.msra.mxu1 %v276_v15  ;;  %v66_v38 = vld [vmem:[#allocation2 + $0x50] sm:$0xff]  ;;  %v67_v39 = vld [vmem:[#allocation2 + $0x58] sm:$0xff]  ;;  %v68_v40 = vld [vmem:[#allocation2 + $0x60] sm:$0xff] }
  0x33   :  { %537 = vmatpush3.msra.mxu0 %v81_v7  ;;  %590 = vmatprep.subr.mxu1 %v275_v17  ;;  %v69_v41 = vld [vmem:[#allocation2 + $0x68] sm:$0xff]  ;;  %v70_v42 = vld [vmem:[#allocation2 + $0x70] sm:$0xff]  ;;  %v71_v43 = vld [vmem:[#allocation2 + $0x78] sm:$0xff] }
  0x34   :  { %538 = vmatprep.subr.mxu0 %v80_v10  ;;  %591 = vmatpush3.msra.mxu1 %v275_v17  ;;  %v268_v44 = vld [vmem:[#allocation7 + $0x18] sm:$0xff]  ;;  %v267_v45 = vld [vmem:[#allocation7 + $0x10] sm:$0xff]  ;;  %v266_v46 = vld [vmem:[#allocation7 + $0x8] sm:$0xff] }
  0x35   :  { %539 = vmatpush3.msra.mxu0 %v80_v10  ;;  %592 = vmatprep.subr.mxu1 %v274_v19  ;;  %v265_v47 = vld [vmem:[#allocation7] sm:$0xff] }
  0x36   :  { %540 = vmatprep.subr.mxu0 %v79_v12  ;;  %593 = vmatpush3.msra.mxu1 %v274_v19 }
  0x37   :  { %541 = vmatpush3.msra.mxu0 %v79_v12  ;;  %594 = vmatprep.subr.mxu1 %v273_v21 }
  0x38   :  { %542 = vmatprep.subr.mxu0 %v78_v14  ;;  %595 = vmatpush3.msra.mxu1 %v273_v21 }
  0x39   :  { %543 = vmatpush3.msra.mxu0 %v78_v14  ;;  %596 = vmatprep.subr.mxu1 %v272_v23 }
  0x3a   :  { %544 = vmatprep.subr.mxu0 %v77_v16  ;;  %597 = vmatpush3.msra.mxu1 %v272_v23 }
  0x3b   :  { %545 = vmatpush3.msra.mxu0 %v77_v16  ;;  %598 = vmatprep.subr.mxu1 %v271_v25 }
  0x3c   :  { %546 = vmatprep.subr.mxu0 %v76_v18  ;;  %599 = vmatpush3.msra.mxu1 %v271_v25 }
  0x3d   :  { %547 = vmatpush3.msra.mxu0 %v76_v18  ;;  %600 = vmatprep.subr.mxu1 %v270_v27 }
  0x3e   :  { %548 = vmatprep.subr.mxu0 %v75_v20  ;;  %601 = vmatpush3.msra.mxu1 %v270_v27 }
  0x3f   :  { %549 = vmatpush3.msra.mxu0 %v75_v20  ;;  %602 = vmatprep.subr.mxu1 %v269_v29 }
  0x40   :  { %550 = vmatprep.subr.mxu0 %v74_v22  ;;  %603 = vmatpush3.msra.mxu1 %v269_v29 }
  0x41   :  { %551 = vmatpush3.msra.mxu0 %v74_v22  ;;  %604 = vmatprep.subr.mxu1 %v268_v44 }
  0x42   :  { %552 = vmatprep.subr.mxu0 %v73_v24  ;;  %605 = vmatpush3.msra.mxu1 %v268_v44 }
  0x43   :  { %553 = vmatpush3.msra.mxu0 %v73_v24  ;;  %606 = vmatprep.subr.mxu1 %v267_v45 }
  0x44   :  { %554 = vmatprep.subr.mxu0 %v72_v26  ;;  %607 = vmatpush3.msra.mxu1 %v267_v45 }
  0x45   :  { %555 = vmatpush3.msra.mxu0 %v72_v26  ;;  %608 = vmatprep.subr.mxu1 %v266_v46 }
  0x46   :  { %557 = vmatmul.mubr.f32.vlgmr.msra.gmra.mxu0 %v57_v28  ;;  %609 = vmatpush3.msra.mxu1 %v266_v46 }
  0x47   :  { %559 = vmatprep.mubr.f32.mxu0 %v58_v30  ;;  %610 = vmatprep.subr.mxu1 %v265_v47 }
  0x48   :  { %611 = vmatpush3.msra.mxu1 %v265_v47 }
  0x4a   :  { %560 = vmatmul.mubr.f32.gmra.mxu0 %v59_v31 }
  0x4b   :  { %562 = vmatprep.mubr.f32.mxu0 %v60_v32 }
  0x4e   :  { %563 = vmatmul.mubr.f32.gmra.mxu0 %v61_v33 }
  0x4f   :  { %565 = vmatprep.mubr.f32.mxu0 %v62_v34 }
  0x52   :  { %566 = vmatmul.mubr.f32.gmra.mxu0 %v63_v35 }
  0x53   :  { %568 = vmatprep.mubr.f32.mxu0 %v64_v36 }
  0x56   :  { %569 = vmatmul.mubr.f32.gmra.mxu0 %v65_v37 }
  0x57   :  { %571 = vmatprep.mubr.f32.mxu0 %v66_v38 }
  0x5a   :  { %572 = vmatmul.mubr.f32.gmra.mxu0 %v67_v39 }
  0x5b   :  { %574 = vmatprep.mubr.f32.mxu0 %v68_v40 }
  0x5e   :  { %575 = vmatmul.mubr.f32.gmra.mxu0 %v69_v41 }
  0x5f   :  { %577 = vmatprep.mubr.f32.mxu0 %v70_v42 }
  0x62   :  { %578 = vmatmul.mubr.f32.gmra.mxu0 %v71_v43 }
 0x106   :  { %v558_v48 = vpop.f32.mrf.mxu0 }
 0x107   :  { %v234_v49 = vmax.f32 %v558_v48, 0.0 }
 0x108   :  { %v154_v50 = vpop.f32.mrf.mxu0 }
 0x109   :  { %v233_v51 = vmax.f32 %v154_v50, 0.0  ;;  %v250_v54 = vmul.f32 %v234_v49, %v234_v49 }
 0x10a   :  { %v561_v52 = vpop.f32.mrf.mxu0 }
 0x10b   :  { %v249_v53 = vmul.f32 %v233_v51, %v233_v51  ;;  %v236_v55 = vmax.f32 %v561_v52, 0.0 }
 0x10c   :  { %v164_v56 = vpop.f32.mrf.mxu0 }
 0x10d   :  { %v235_v57 = vmax.f32 %v164_v56, 0.0  ;;  %612 = vmatprep.mubr.f32.mxu1 %v249_v53  ;;  %v252_v60 = vmul.f32 %v236_v55, %v236_v55 }
 0x10e   :  { %v564_v58 = vpop.f32.mrf.mxu0  ;;  %613 = vmatmul.mubr.f32.vlgmr.msra.gmra.mxu1 %v250_v54 }
 0x10f   :  { %v251_v59 = vmul.f32 %v235_v57, %v235_v57  ;;  %v238_v61 = vmax.f32 %v564_v58, 0.0 }
 0x110   :  { %v174_v62 = vpop.f32.mrf.mxu0 }
 0x111   :  { %v237_v63 = vmax.f32 %v174_v62, 0.0  ;;  %615 = vmatprep.mubr.f32.mxu1 %v251_v59  ;;  %v254_v2 = vmul.f32 %v238_v61, %v238_v61 }
 0x112   :  { %v567_v0 = vpop.f32.mrf.mxu0  ;;  %616 = vmatmul.mubr.f32.gmra.mxu1 %v252_v60 }
 0x113   :  { %v253_v1 = vmul.f32 %v237_v63, %v237_v63  ;;  %v240_v3 = vmax.f32 %v567_v0, 0.0 }
 0x114   :  { %v184_v4 = vpop.f32.mrf.mxu0 }
 0x115   :  { %v239_v5 = vmax.f32 %v184_v4, 0.0  ;;  %618 = vmatprep.mubr.f32.mxu1 %v253_v1  ;;  %v256_v8 = vmul.f32 %v240_v3, %v240_v3 }
 0x116   :  { %v570_v6 = vpop.f32.mrf.mxu0  ;;  %619 = vmatmul.mubr.f32.gmra.mxu1 %v254_v2 }
 0x117   :  { %v255_v7 = vmul.f32 %v239_v5, %v239_v5  ;;  %v242_v9 = vmax.f32 %v570_v6, 0.0 }
 0x118   :  { %v194_v10 = vpop.f32.mrf.mxu0 }
 0x119   :  { %v241_v11 = vmax.f32 %v194_v10, 0.0  ;;  %621 = vmatprep.mubr.f32.mxu1 %v255_v7  ;;  %v258_v14 = vmul.f32 %v242_v9, %v242_v9 }
 0x11a   :  { %v573_v12 = vpop.f32.mrf.mxu0  ;;  %622 = vmatmul.mubr.f32.gmra.mxu1 %v256_v8 }
 0x11b   :  { %v257_v13 = vmul.f32 %v241_v11, %v241_v11  ;;  %v244_v15 = vmax.f32 %v573_v12, 0.0 }
 0x11c   :  { %v204_v16 = vpop.f32.mrf.mxu0 }
 0x11d   :  { %v243_v17 = vmax.f32 %v204_v16, 0.0  ;;  %624 = vmatprep.mubr.f32.mxu1 %v257_v13  ;;  %v260_v20 = vmul.f32 %v244_v15, %v244_v15 }
 0x11e   :  { %v576_v18 = vpop.f32.mrf.mxu0  ;;  %625 = vmatmul.mubr.f32.gmra.mxu1 %v258_v14 }
 0x11f   :  { %v259_v19 = vmul.f32 %v243_v17, %v243_v17  ;;  %v246_v21 = vmax.f32 %v576_v18, 0.0 }
 0x120   :  { %v214_v22 = vpop.f32.mrf.mxu0 }
 0x121   :  { %v245_v23 = vmax.f32 %v214_v22, 0.0  ;;  %627 = vmatprep.mubr.f32.mxu1 %v259_v19  ;;  %v262_v26 = vmul.f32 %v246_v21, %v246_v21 }
 0x122   :  { %v579_v24 = vpop.f32.mrf.mxu0  ;;  %628 = vmatmul.mubr.f32.gmra.mxu1 %v260_v20 }
 0x123   :  { %v261_v25 = vmul.f32 %v245_v23, %v245_v23  ;;  %v248_v27 = vmax.f32 %v579_v24, 0.0 }
 0x124   :  { %v224_v28 = vpop.f32.mrf.mxu0 }
 0x125   :  { %v247_v29 = vmax.f32 %v224_v28, 0.0  ;;  %630 = vmatprep.mubr.f32.mxu1 %v261_v25  ;;  %v264_v31 = vmul.f32 %v248_v27, %v248_v27 }
 0x126   :  { %631 = vmatmul.mubr.f32.gmra.mxu1 %v262_v26 }
 0x127   :  { %v263_v30 = vmul.f32 %v247_v29, %v247_v29 }
 0x129   :  { %633 = vmatprep.mubr.f32.mxu1 %v263_v30 }
 0x12a   :  { %634 = vmatmul.mubr.f32.gmra.mxu1 %v264_v31 }
 0x1ce   :  { %v614_v32 = vpop.f32.mrf.mxu1 }
 0x1cf   :  { %427 = vst [vmem:[#allocation8 + $0x8] sm:$0xff] %v614_v32 }
 0x1d0   :  { %v347_v33 = vpop.f32.mrf.mxu1 }
 0x1d1   :  { %426 = vst [vmem:[#allocation8] sm:$0xff] %v347_v33 }
 0x1d2   :  { %v617_v34 = vpop.f32.mrf.mxu1 }
 0x1d3   :  { %429 = vst [vmem:[#allocation8 + $0x18] sm:$0xff] %v617_v34 }
 0x1d4   :  { %v357_v35 = vpop.f32.mrf.mxu1 }
 0x1d5   :  { %428 = vst [vmem:[#allocation8 + $0x10] sm:$0xff] %v357_v35 }
 0x1d6   :  { %v620_v36 = vpop.f32.mrf.mxu1 }
 0x1d7   :  { %431 = vst [vmem:[#allocation8 + $0x28] sm:$0xff] %v620_v36 }
 0x1d8   :  { %v367_v37 = vpop.f32.mrf.mxu1 }
 0x1d9   :  { %430 = vst [vmem:[#allocation8 + $0x20] sm:$0xff] %v367_v37 }
 0x1da   :  { %v623_v38 = vpop.f32.mrf.mxu1 }
 0x1db   :  { %433 = vst [vmem:[#allocation8 + $0x38] sm:$0xff] %v623_v38 }
 0x1dc   :  { %v377_v39 = vpop.f32.mrf.mxu1 }
 0x1dd   :  { %432 = vst [vmem:[#allocation8 + $0x30] sm:$0xff] %v377_v39 }
 0x1de   :  { %v626_v40 = vpop.f32.mrf.mxu1 }
 0x1df   :  { %435 = vst [vmem:[#allocation8 + $0x48] sm:$0xff] %v626_v40 }
 0x1e0   :  { %v387_v41 = vpop.f32.mrf.mxu1 }
 0x1e1   :  { %434 = vst [vmem:[#allocation8 + $0x40] sm:$0xff] %v387_v41 }
 0x1e2   :  { %v629_v42 = vpop.f32.mrf.mxu1 }
 0x1e3   :  { %437 = vst [vmem:[#allocation8 + $0x58] sm:$0xff] %v629_v42 }
 0x1e4   :  { %v397_v43 = vpop.f32.mrf.mxu1 }
 0x1e5   :  { %436 = vst [vmem:[#allocation8 + $0x50] sm:$0xff] %v397_v43 }
 0x1e6   :  { %v632_v44 = vpop.f32.mrf.mxu1 }
 0x1e7   :  { %439 = vst [vmem:[#allocation8 + $0x68] sm:$0xff] %v632_v44 }
 0x1e8   :  { %v407_v45 = vpop.f32.mrf.mxu1 }
 0x1e9   :  { %438 = vst [vmem:[#allocation8 + $0x60] sm:$0xff] %v407_v45 }
 0x1ea   :  { %v635_v46 = vpop.f32.mrf.mxu1 }
 0x1eb   :  { %441 = vst [vmem:[#allocation8 + $0x78] sm:$0xff] %v635_v46 }
 0x1ec   :  { %v417_v47 = vpop.f32.mrf.mxu1 }
 0x1ed   :  { %440 = vst [vmem:[#allocation8 + $0x70] sm:$0xff] %v417_v47 }
 0x1ee   :  { %713 = shalt.err (!%p710_p5)
}
 0x1ef   :  { %453 = dma.vmem_to_hbm [thread:$0]  %s448_s2, 2048, %s781_s3, [#allocation4], %s730_s17, %s730_s17, %s731_s18  }
 0x1f0   :  { %726 = dma.done.wait [#allocation4], 2048  }
 0x1f1   :  { %727 = vsyncadd [#allocation4], 4294965248 }
 0x1f2   :  { %457 = vsyncpa [#allocation3], 1 }
 0x1f3   :  { %458 = vsyncpa [#allocation6], 1 }
 0x1f4   :  { %459 = vsyncpa [#allocation4], 1 }

</bundles_post_ra>
